<compile_context>
chip_gen: v6e
topology: v6e:2x2x1
jax: 0.10.0
libtpu: 0.0.40
codegen_flags: <defaults>
</compile_context>

<pallas_src>
import functools

import jax
import jax.numpy as jnp
from jax.experimental import pallas as pl
from jax.experimental.pallas import tpu as pltpu


def _round_up(x, m):
    return ((x + m - 1) // m) * m


def _gather_cos_kernel(lo_ref, hi_ref, cos_ref, faces_ref, out_ref):
    # lo_ref/hi_ref: (B * n_j,) i32 SMEM  per-(batch, NF3-tile) first/last NV-tile touched
    # cos_ref:       (1, 2, TILE_V) bf16  [cos_hi; cos_lo] rows for one NV tile
    # faces_ref:     (1, 1, TILE_F) i32   flattened face-vertex indices (one NF3 tile)
    # out_ref:       (1, 1, TILE_F) f32   gathered cos, resident accumulator across NV tiles
    b = pl.program_id(0)
    j = pl.program_id(1)
    k = pl.program_id(2)
    n_j = pl.num_programs(1)
    tile_v = cos_ref.shape[-1]
    tile_f = faces_ref.shape[-1]

    @pl.when(k == 0)
    def _init():
        out_ref[...] = jnp.zeros_like(out_ref)

    idx = b * n_j + j
    in_range = jnp.logical_and(k >= lo_ref[idx], k <= hi_ref[idx])

    @pl.when(in_range)
    def _compute():
        cos2 = cos_ref[0]                      # (2, TILE_V) bf16  [hi; lo]
        f = faces_ref[0]                       # (1, TILE_F) absolute vertex indices
        f_local = f - k * tile_v               # local index within this NV tile

        # bf16 one-hot (TILE_V, TILE_F) from a single compare + cast; contraction on the MXU.
        row_ids = jax.lax.broadcasted_iota(jnp.int32, (tile_v, tile_f), 0)
        onehot = (row_ids == f_local).astype(jnp.bfloat16)

        partial = jnp.dot(cos2, onehot, preferred_element_type=jnp.float32)   # (2, TILE_F)
        out_ref[...] += jnp.sum(partial, axis=0, keepdims=True)[None]         # hi + lo


def lighting_forward(vertices, vertex_normals, faces, *,
                     intensity_ambient=0.5, color_ambient=(1.0, 1.0, 1.0),
                     intensity_directional=0.5, color_directional=(1.0, 1.0, 1.0),
                     direction=(0.0, 1.0, 0.0)):
    """Pallas equivalent of Lighting.forward(mesh) -> face_ver_lights (B, NF, 3, 3)."""
    B, NV, _ = vertices.shape
    _, NF, _ = faces.shape
    NF3 = NF * 3

    # --- wrapper-side (fused XLA elementwise): directional cosine per vertex -------------
    direction_v = jnp.asarray(direction, jnp.float32)
    cos = jnp.maximum(
        jnp.einsum("bvc,c->bv", vertex_normals.astype(jnp.float32), direction_v), 0.0)

    # hi/lo bf16 split keeps ~f32 accuracy while feeding the MXU native bf16 operands.
    cos_hi = cos.astype(jnp.bfloat16)
    cos_lo = (cos - cos_hi.astype(jnp.float32)).astype(jnp.bfloat16)
    cos2 = jnp.stack([cos_hi, cos_lo], axis=1)                               # (B, 2, NV)

    # --- lane-dense padding and tile selection -------------------------------------------
    tile_v = min(2048, _round_up(NV, 128))
    tf_full = _round_up(NF3, 128)
    tile_f = min(1024, tf_full)
    # Keep >= 2 NF3 tiles when B == 1 so both v7x TensorCores get work.
    if B == 1 and tile_f == tf_full and tf_full >= 256:
        tile_f = _round_up(tf_full // 2, 128)
    NV_pad = _round_up(NV, tile_v)
    NF3_pad = _round_up(NF3, tile_f)
    n_j = NF3_pad // tile_f
    n_k = NV_pad // tile_v

    cos_p = jnp.pad(cos2, ((0, 0), (0, 0), (0, NV_pad - NV)))                # (B, 2, NV_pad)

    faces_flat = faces.reshape(B, NF3).astype(jnp.int32)
    # Edge-pad so padded slots do not widen the per-tile index range (still valid indices).
    faces_pf = jnp.pad(faces_flat, ((0, 0), (0, NF3_pad - NF3)), mode="edge")
    faces_p = faces_pf[:, None, :]                                           # (B, 1, NF3_pad)

    # Per-(b, NF3-tile) range of NV tiles actually referenced (scalar prefetch -> SMEM).
    f_tiles = faces_pf.reshape(B, n_j, tile_f)
    lo = (jnp.min(f_tiles, axis=-1) // tile_v).astype(jnp.int32).reshape(-1)  # (B * n_j,)
    hi = (jnp.max(f_tiles, axis=-1) // tile_v).astype(jnp.int32).reshape(-1)  # (B * n_j,)

    grid = (B, n_j, n_k)

    gathered = pl.pallas_call(
        _gather_cos_kernel,
        out_shape=jax.ShapeDtypeStruct((B, 1, NF3_pad), jnp.float32),
        grid_spec=pltpu.PrefetchScalarGridSpec(
            num_scalar_prefetch=2,
            grid=grid,
            in_specs=[
                pl.BlockSpec((1, 2, tile_v), lambda b, j, k, lo, hi: (b, 0, k)),   # cos rows
                pl.BlockSpec((1, 1, tile_f), lambda b, j, k, lo, hi: (b, 0, j)),   # faces
            ],
            out_specs=pl.BlockSpec((1, 1, tile_f), lambda b, j, k, lo, hi: (b, 0, j)),
        ),
        compiler_params=pltpu.CompilerParams(
            dimension_semantics=("parallel", "parallel", "arbitrary"),
            vmem_limit_bytes=40 * 1024 * 1024,   # fits v7x's 64 MiB VMEM with headroom
        ),
        cost_estimate=pl.CostEstimate(
            flops=2 * 2 * B * NV_pad * NF3_pad,
            transcendentals=0,
            bytes_accessed=B * (2 * 2 * NV_pad + 4 * NF3_pad + 4 * NF3_pad),
        ),
    )(lo, hi, cos_p, faces_p)

    cos_face = gathered[:, 0, :NF3]                                          # (B, NF3)

    # --- wrapper-side affine (single fused XLA op) + reshape to (B, NF, 3verts, 3colors) --
    amb = intensity_ambient * jnp.asarray(color_ambient, jnp.float32)        # (3,)
    dirc = intensity_directional * jnp.asarray(color_directional, jnp.float32)
    light_face = amb[None, None, :] + dirc[None, None, :] * cos_face[:, :, None]  # (B, NF3, 3)
    return light_face.reshape(B, NF, 3, 3)


def lighting_reference(vertices, vertex_normals, faces, *,
                       intensity_ambient=0.5, color_ambient=(1.0, 1.0, 1.0),
                       intensity_directional=0.5, color_directional=(1.0, 1.0, 1.0),
                       direction=(0.0, 1.0, 0.0)):
    """Plain-JAX reference matching the PyTorch module."""
    B = vertices.shape[0]
    light = jnp.zeros_like(vertices, dtype=jnp.float32)
    light = light + intensity_ambient * jnp.asarray(color_ambient, jnp.float32)[None, None, :]
    cos = jnp.maximum(
        jnp.sum(vertex_normals * jnp.asarray(direction, jnp.float32)[None, None, :], axis=2), 0.0)
    light = light + intensity_directional * (
        jnp.asarray(color_directional, jnp.float32)[None, None, :] * cos[:, :, None])
    return jnp.stack([light[b][faces[b]] for b in range(B)])


if __name__ == "__main__":
    B, NV, NF = 2, 128, 32

    key = jax.random.PRNGKey(0)
    k_v, k_n, k_f = jax.random.split(key, 3)

    vertices = jax.random.normal(k_v, (B, NV, 3), dtype=jnp.float32)
    normals = jax.random.normal(k_n, (B, NV, 3), dtype=jnp.float32)
    normals = normals / (jnp.linalg.norm(normals, axis=-1, keepdims=True) + 1e-8)
    faces = jax.random.randint(k_f, (B, NF, 3), 0, NV, dtype=jnp.int32)

    params = dict(
        intensity_ambient=0.5, color_ambient=(1.0, 0.9, 0.8),
        intensity_directional=0.5, color_directional=(0.7, 1.0, 0.6),
        direction=(0.0, 1.0, 0.0),
    )

    out = jax.jit(functools.partial(lighting_forward, **params))(vertices, normals, faces)
    out = jax.block_until_ready(out)

    ref = lighting_reference(vertices, normals, faces, **params)

    assert out.shape == (B, NF, 3, 3), out.shape
    # bf16 hi+lo split keeps the gather accurate to ~4e-6 absolute; 1e-4 gives margin.
    assert jnp.allclose(out, ref, atol=1e-4, rtol=1e-4), float(jnp.max(jnp.abs(out - ref)))
    print("KERNEL_OK")
</pallas_src>

<mosaic_0001>
module attributes {stable_mosaic.version = 11 : i64} {
  func.func @_gather_cos_kernel(%arg0: i32, %arg1: i32, %arg2: i32, %arg3: memref<2xi32, #tpu.memory_space<smem>>, %arg4: memref<2xi32, #tpu.memory_space<smem>>, %arg5: memref<1x2x128xbf16, #tpu.memory_space<vmem>>, %arg6: memref<1x1x128xi32, #tpu.memory_space<vmem>>, %arg7: memref<1x1x128xf32, #tpu.memory_space<vmem>>) attributes {dimension_semantics = [#tpu.dimension_semantics<parallel>, #tpu.dimension_semantics<parallel>, #tpu.dimension_semantics<arbitrary>], iteration_bounds = array<i64: 2, 1, 1>, scalar_prefetch = 2 : i64, scratch_operands = 0 : i64, tpu.core_type = #tpu.core_type<tc>, window_params = [{transform_indices = @transform_0, window_bounds = array<i64: 1, 2, 128>}, {transform_indices = @transform_1, window_bounds = array<i64: 1, 1, 128>}, {transform_indices = @transform_2, window_bounds = array<i64: 1, 1, 128>}]} {
    %c0_i32 = arith.constant 0 : i32
    %0 = arith.cmpi eq, %arg2, %c0_i32 : i32
    %1 = arith.extui %0 : i1 to i32
    %c0_i32_0 = arith.constant 0 : i32
    %2 = arith.cmpi ne, %1, %c0_i32_0 : i32
    scf.if %2 {
      %cst = arith.constant 0.000000e+00 : f32
      %14 = vector.broadcast %cst : f32 to vector<1x1x128xf32>
      %c0 = arith.constant 0 : index
      %c0_2 = arith.constant 0 : index
      %c0_3 = arith.constant 0 : index
      %15 = vector.load %arg7[%c0, %c0_2, %c0_3] : memref<1x1x128xf32, #tpu.memory_space<vmem>>, vector<1x1x128xf32>
      tpu.vector_store %arg7[%c0, %c0_2, %c0_3], %14 {strides = array<i32>} : memref<1x1x128xf32, #tpu.memory_space<vmem>>, vector<1x1x128xf32>,
    } else {
    }
    %c1_i32 = arith.constant 1 : i32
    %3 = arith.muli %arg0, %c1_i32 : i32
    %4 = arith.addi %3, %arg1 : i32
    %5 = arith.index_cast %4 : i32 to index
    %6 = memref.load %arg3[%5] : memref<2xi32, #tpu.memory_space<smem>>
    %7 = arith.cmpi sge, %arg2, %6 : i32
    %8 = arith.index_cast %4 : i32 to index
    %9 = memref.load %arg4[%8] : memref<2xi32, #tpu.memory_space<smem>>
    %10 = arith.cmpi sle, %arg2, %9 : i32
    %11 = arith.andi %7, %10 : i1
    %12 = arith.extui %11 : i1 to i32
    %c0_i32_1 = arith.constant 0 : i32
    %13 = arith.cmpi ne, %12, %c0_i32_1 : i32
    scf.if %13 {
      %c0 = arith.constant 0 : index
      %c0_2 = arith.constant 0 : index
      %c0_3 = arith.constant 0 : index
      %14 = vector.load %arg5[%c0, %c0_2, %c0_3] : memref<1x2x128xbf16, #tpu.memory_space<vmem>>, vector<1x2x128xbf16>
      %15 = vector.shape_cast %14 : vector<1x2x128xbf16> to vector<2x128xbf16>
      %c0_4 = arith.constant 0 : index
      %c0_5 = arith.constant 0 : index
      %c0_6 = arith.constant 0 : index
      %16 = vector.load %arg6[%c0_4, %c0_5, %c0_6] : memref<1x1x128xi32, #tpu.memory_space<vmem>>, vector<1x1x128xi32>
      %17 = vector.shape_cast %16 : vector<1x1x128xi32> to vector<1x128xi32>
      %c128_i32 = arith.constant 128 : i32
      %18 = arith.muli %arg2, %c128_i32 : i32
      %19 = vector.broadcast %18 : i32 to vector<1x128xi32>
      %20 = arith.subi %17, %19 : vector<1x128xi32>
      %21 = tpu.iota {dimensions = array<i32: 0>} : vector<128x128xi32>
      %22 = vector.broadcast %20 : vector<1x128xi32> to vector<128x128xi32>
      %23 = arith.cmpi eq, %21, %22 : vector<128x128xi32>
      %24 = arith.extui %23 : vector<128x128xi1> to vector<128x128xi32>
      %25 = arith.sitofp %24 : vector<128x128xi32> to vector<128x128xf32>
      %26 = arith.truncf %25 : vector<128x128xf32> to vector<128x128xbf16>
      %cst = arith.constant dense<0.000000e+00> : vector<2x128xf32>
      %27 = tpu.matmul %15, %26, %cst {dimension_numbers = #tpu.dot_dimension_numbers<[1], [0], [0], [1], [0, 0, 1, 1], [], []>} : vector<2x128xbf16>, vector<128x128xbf16>, vector<2x128xf32> -> vector<2x128xf32>
      %c0_7 = arith.constant 0 : index
      %c0_8 = arith.constant 0 : index
      %c0_9 = arith.constant 0 : index
      %28 = vector.load %arg7[%c0_7, %c0_8, %c0_9] : memref<1x1x128xf32, #tpu.memory_space<vmem>>, vector<1x1x128xf32>
      %cst_10 = arith.constant dense<0.000000e+00> : vector<128xf32>
      %29 = vector.multi_reduction <add>, %27, %cst_10 [0] : vector<2x128xf32> to vector<128xf32>
      %30 = vector.shape_cast %29 : vector<128xf32> to vector<1x128xf32>
      %31 = vector.shape_cast %30 : vector<1x128xf32> to vector<1x1x128xf32>
      %32 = arith.addf %28, %31 : vector<1x1x128xf32>
      %c0_11 = arith.constant 0 : index
      %c0_12 = arith.constant 0 : index
      %c0_13 = arith.constant 0 : index
      %33 = vector.load %arg7[%c0_11, %c0_12, %c0_13] : memref<1x1x128xf32, #tpu.memory_space<vmem>>, vector<1x1x128xf32>
      tpu.vector_store %arg7[%c0_11, %c0_12, %c0_13], %32 {strides = array<i32>} : memref<1x1x128xf32, #tpu.memory_space<vmem>>, vector<1x1x128xf32>,
    } else {
    }
    return
  }
  func.func @transform_0(%arg0: i32, %arg1: i32, %arg2: i32, %arg3: memref<2xi32, #tpu.memory_space<smem>>, %arg4: memref<2xi32, #tpu.memory_space<smem>>) -> (i32, i32, i32) {
    %c0_i32 = arith.constant 0 : i32
    %c0_i32_0 = arith.constant 0 : i32
    return %arg0, %c0_i32, %arg2 : i32, i32, i32
  }
  func.func @transform_1(%arg0: i32, %arg1: i32, %arg2: i32, %arg3: memref<2xi32, #tpu.memory_space<smem>>, %arg4: memref<2xi32, #tpu.memory_space<smem>>) -> (i32, i32, i32) {
    %c0_i32 = arith.constant 0 : i32
    %c0_i32_0 = arith.constant 0 : i32
    return %arg0, %c0_i32, %arg1 : i32, i32, i32
  }
  func.func @transform_2(%arg0: i32, %arg1: i32, %arg2: i32, %arg3: memref<2xi32, #tpu.memory_space<smem>>, %arg4: memref<2xi32, #tpu.memory_space<smem>>) -> (i32, i32, i32) {
    %c0_i32 = arith.constant 0 : i32
    %c0_i32_0 = arith.constant 0 : i32
    return %arg0, %c0_i32, %arg1 : i32, i32, i32
  }
}

</mosaic_0001>

<bundles_post_ra>
// kernel: lighting_forward.1
= control target key start
LH: loop header
LB: loop body
LE: loop exit
PB: predicated region body
PF: predicated region fallthrough
CT: control target
= control target key end

     0   :  { %s676_s0 = inlined_call_operand.vmem [shape: s32[2], index: 0, kind: input, shape index: {}]   ;;  %s677_s2 = inlined_call_operand.vmem [shape: bf16[2,2,128], index: 2, kind: input, shape index: {}]   ;;  %s678_s3 = inlined_call_operand.vmem [shape: s32[2,1,128], index: 3, kind: input, shape index: {}]   ;;  %s679_s4 = inlined_call_operand.vmem [shape: f32[2,1,128], index: 4, kind: output, shape index: {}]   ;;  %s680_s1 = inlined_call_operand.vmem [shape: s32[2], index: 1, kind: input, shape index: {}]  }
   0x1   :  { %s9_s17 = sshll.u32 %s676_s0, 4  ;;  %s13_s20 = sshll.u32 %s680_s1, 4  ;;  %s10_s17 = int_to_ptr.vmem [resolvable:$true] %s9_s17  ;;  %s14_s20 = int_to_ptr.vmem [resolvable:$true] %s13_s20 }
   0x2   :  { %s538_s21 = scalar_lea.vmem %s10_s17, 16  ;;  %p543_p1 = scmp.lt.s32.totalorder %s10_s17, %s10_s17 }
   0x3   :  { %p539_p0 = scmp.ne.s32.totalorder %s10_s17, %s538_s21  ;;  %p544_p2 = scmp.lt.s32.totalorder %s538_s21, %s538_s21 }
   0x5   :  { %p545_p3 = por %p544_p2, %p543_p1 }
   0x7   :  { %p546_p4 = pnand %p545_p3, %p539_p0 }
   0x9   :  { %549 = shalt.err (!%p546_p4)  }
   0xa   :  { %s588_s22 = smov [#allocation3]   ;;  %s550_s23 = scalar_lea.vmem %s14_s20, 16 }
   0xb   :  { %12 = dma.vmem_to_smem %s10_s17, 16, %s588_s22, [#allocation2] }
   0xc   :  { %p551_p5 = scmp.ne.s32.totalorder %s14_s20, %s550_s23  ;;  %p555_p6 = scmp.lt.s32.totalorder %s14_s20, %s14_s20 }
   0xd   :  { %p556_p7 = scmp.lt.s32.totalorder %s550_s23, %s550_s23 }
   0xf   :  { %p557_p8 = por %p556_p7, %p555_p6 }
  0x11   :  { %p558_p9 = pnand %p557_p8, %p551_p5 }
  0x13   :  { %561 = shalt.err (!%p558_p9)  }
  0x14   :  { %s589_s0 = smov [#allocation4]  }
  0x15   :  { %16 = dma.vmem_to_smem %s14_s20, 16, %s589_s0, [#allocation2] }
  0x16   :  { %574 = dma.done.wait [#allocation2], 32 }
  0x17   :  { %575 = vsyncadd [#allocation2], 4294967264 }
  0x18   :  { %18 = sfence }
  0x19   :  { %s625_s1 = smov 0   ;;  %s627_s24 = smov 0  }
  0x1a   :  { %s629_s25 = smov 0  }
  0x1b LB: > { %s43_s26 = sadd.s32 1, %s582_s24  ;;  %p441_p10 = scmp.ge.s32.totalorder %s586_s25, 1  ;;  %s586_s25 = sphi %s629_s25, %s24_s25   ;;  %s582_s24 = sphi %s627_s24, %s682_s24   ;;  %s578_s1 = sphi %s625_s1, %s681_s1  }
  0x1c   : > { %p45_p11 = scmp.ge.s32.totalorder %s43_s26, 2  ;;  %p161_p12 = scmp.lt.s32.totalorder %s586_s25, 3 }
  0x1e   : > { %s684_s26 = smov (%p45_p11, %s43_s26), 0  ;;  %p162_p13 = pnand %p441_p10, %p161_p12 }
  0x1f   : > { %p191_p0 = scmp.lt.s32.totalorder (!%p162_p13), %s578_s1, 1  ;;  %s216_s27 = sld [smem:[#allocation3 + %s578_s1]] (!%p162_p13) }
  0x20   : > { %165 = sbr.rel (%p162_p13) target bundleno = 296 (0x128), region = 28  ;;  %s218_s28 = sld [smem:[#allocation4 + %s578_s1]] (!%p162_p13) }
  0x25   : > { %s686_s1 = smov (!%p191_p0, %s578_s1), 1  ;;  %v590_v0 = vmov 0.0   ;;  %p442_p1 = scmp.le.s32.totalorder %s216_s27, 0 }
  0x26   : > { %s196_s5 = scalar_lea.vmem %s677_s2, %s686_s1  ;;  %s202_s8 = scalar_lea.vmem %s678_s3, %s686_s1 }
  0x27   : > { %s657_s11 = scalar_lea.vmem %s679_s4, %s686_s1  ;;  %p443_p2 = scmp.ge.s32.totalorder %s218_s28, 0 }
  0x28   : > { %214 = vst [vmem:[%s657_s11] sm:$0x1] %v590_v0 }
  0x29   : > { %p220_p3 = pnand %p443_p2, %p442_p1 }
  0x2b   : > { %223 = sbr.rel (%p220_p3) target bundleno = 296 (0x128), region = 36 }
  0x30   : > { %v229_v1 = vlaneseq  ;;  %v591_v2 = vmov 0.0   ;;  %vm592_vm0 = vmmov 0   ;;  %v444_v4 = vld [vmem:[%s202_s8] ss:$0 sm:$0xff]  ;;  %v593_v11 = vmov 1.0|1.0  }
  0x31   : > { %488 = vmatprep.subr.bf16.mxu0 %v591_v2  ;;  %504 = vmatprep.mubr.msk.bf16.mxu0 %vm592_vm0, %v591_v2  ;;  %v224_v21 = vld [vmem:[%s196_s5] sm:$0x1] }
  0x32   : > { %v230_v3 = vshrl.u32 %v229_v1, 7  ;;  %v346_v32 = vld [vmem:[%s657_s11] sm:$0x1] }
  0x34   : > { %v244_v5 = vadd.s32 112, %v230_v3  ;;  %v245_v6 = vadd.s32 120, %v230_v3  ;;  %v242_v7 = vadd.s32 96, %v230_v3  ;;  %v243_v8 = vadd.s32 104, %v230_v3 }
  0x35   : > { %v240_v9 = vadd.s32 80, %v230_v3  ;;  %v241_v10 = vadd.s32 88, %v230_v3  ;;  %v238_v12 = vadd.s32 64, %v230_v3  ;;  %v239_v13 = vadd.s32 72, %v230_v3 }
  0x36   : > { %vm264_vm1 = vcmp.eq.s32.totalorder %v244_v5, %v444_v4  ;;  %vm265_vm2 = vcmp.eq.s32.totalorder %v245_v6, %v444_v4  ;;  %vm262_vm3 = vcmp.eq.s32.totalorder %v242_v7, %v444_v4  ;;  %vm263_vm4 = vcmp.eq.s32.totalorder %v243_v8, %v444_v4 }
  0x37   : > { %vm461_vm5 = vmpackc.low %vm265_vm2, %vm264_vm1  ;;  %vm260_vm7 = vcmp.eq.s32.totalorder %v240_v9, %v444_v4  ;;  %vm261_vm8 = vcmp.eq.s32.totalorder %v241_v10, %v444_v4  ;;  %vm258_vm10 = vcmp.eq.s32.totalorder %v238_v12, %v444_v4  ;;  %vm259_vm11 = vcmp.eq.s32.totalorder %v239_v13, %v444_v4 }
  0x38   : > { %489 = vmatpush3.bf16.msk.msra.mxu0 %vm461_vm5, %v593_v11  ;;  %vm463_vm6 = vmpackc.low %vm263_vm4, %vm262_vm3  ;;  %v236_v14 = vadd.s32 48, %v230_v3  ;;  %v237_v15 = vadd.s32 56, %v230_v3  ;;  %v234_v16 = vadd.s32 32, %v230_v3  ;;  %v235_v17 = vadd.s32 40, %v230_v3 }
  0x39   : > { %490 = vmatprep.subr.bf16.mxu0 %v591_v2  ;;  %vm465_vm9 = vmpackc.low %vm261_vm8, %vm260_vm7  ;;  %v232_v18 = vadd.s32 16, %v230_v3  ;;  %v233_v19 = vadd.s32 24, %v230_v3  ;;  %v231_v20 = vadd.s32 8, %v230_v3 }
  0x3a   : > { %vm467_vm12 = vmpackc.low %vm259_vm11, %vm258_vm10  ;;  %vm256_vm13 = vcmp.eq.s32.totalorder %v236_v14, %v444_v4  ;;  %vm257_vm14 = vcmp.eq.s32.totalorder %v237_v15, %v444_v4  ;;  %vm254_vm0 = vcmp.eq.s32.totalorder %v234_v16, %v444_v4  ;;  %vm255_vm1 = vcmp.eq.s32.totalorder %v235_v17, %v444_v4 }
  0x3b   : > { %vm469_vm15 = vmpackc.low %vm257_vm14, %vm256_vm13  ;;  %vm252_vm3 = vcmp.eq.s32.totalorder %v232_v18, %v444_v4  ;;  %vm253_vm4 = vcmp.eq.s32.totalorder %v233_v19, %v444_v4  ;;  %vm251_vm7 = vcmp.eq.s32.totalorder %v231_v20, %v444_v4 }
  0x3c   : > { %491 = vmatpush3.bf16.msk.msra.mxu0 %vm463_vm6, %v593_v11  ;;  %vm471_vm2 = vmpackc.low %vm255_vm1, %vm254_vm0  ;;  %vm250_vm6 = vcmp.eq.s32.totalorder %v230_v3, %v444_v4 }
  0x3d   : > { %492 = vmatprep.subr.bf16.mxu0 %v591_v2  ;;  %vm473_vm5 = vmpackc.low %vm253_vm4, %vm252_vm3 }
  0x3e   : > { %vm475_vm8 = vmpackc.low %vm251_vm7, %vm250_vm6 }
  0x40   : > { %493 = vmatpush3.bf16.msk.msra.mxu0 %vm465_vm9, %v593_v11  ;;  %vm347_vm9 = vcmask 1041408  }
  0x41   : > { %494 = vmatprep.subr.bf16.mxu0 %v591_v2 }
  0x44   : > { %495 = vmatpush3.bf16.msk.msra.mxu0 %vm467_vm12, %v593_v11 }
  0x45   : > { %496 = vmatprep.subr.bf16.mxu0 %v591_v2 }
  0x48   : > { %497 = vmatpush3.bf16.msk.msra.mxu0 %vm469_vm15, %v593_v11 }
  0x49   : > { %498 = vmatprep.subr.bf16.mxu0 %v591_v2 }
  0x4c   : > { %499 = vmatpush3.bf16.msk.msra.mxu0 %vm471_vm2, %v593_v11 }
  0x4d   : > { %500 = vmatprep.subr.bf16.mxu0 %v591_v2 }
  0x50   : > { %501 = vmatpush3.bf16.msk.msra.mxu0 %vm473_vm5, %v593_v11 }
  0x51   : > { %502 = vmatprep.subr.bf16.mxu0 %v591_v2 }
  0x54   : > { %503 = vmatpush3.bf16.msk.msra.mxu0 %vm475_vm8, %v593_v11 }
  0x57   : > { %505 = vmatmul.mubr.bf16.vlgmr.msra.gmra.mxu0 %v224_v21 }
 0x117   : > { %v340_v22 = vpop.f32.mrf.mxu0 }
 0x118   : > { %v348_v23 = vsel %vm347_vm9, %v340_v22, 0.0 }
 0x119   : > { %v349_v24 = vrot.slane %v348_v23, 4  ;;  %v506_v25 = vpop.f32.mrf.mxu0 }
 0x11b   : > { %v350_v26 = vadd.f32 %v349_v24, %v348_v23  ;;  %v343_v27 = vpop.f32.mrf.mxu0 }
 0x11d   : > { %v351_v28 = vrot.slane %v350_v26, 2  ;;  %v507_v29 = vpop.f32.mrf.mxu0 }
 0x11f   : > { %v352_v30 = vadd.f32 %v351_v28, %v350_v26 }
 0x121   : > { %v353_v31 = vrot.slane %v352_v30, 1 }
 0x123   : > { %v354_v33 = vadd.f32 %v353_v31, %v352_v30 }
 0x125   : > { %v355_v34 = vadd.f32 %v354_v33, %v346_v32 }
 0x127   : > { %356 = vst [vmem:[%s657_s11] sm:$0x1] %v355_v34 }
 0x128 PF: > { %s24_s25 = sadd.s32 1, %s586_s25   ;;  %s681_s1 = smov %s582_s24 }
 0x129   : > { %p21_p4 = scmp.ge.s32.totalorder %s24_s25, 4   ;;  %s682_s24 = smov %s684_s26 }
 0x12b   :  { %23 = sbr.rel (!%p21_p4) target bundleno = 27 (0x1b), region = 69 }

</bundles_post_ra>
